<compile_context>
chip_gen: v6e
topology: v6e:2x2x1
jax: 0.10.0
libtpu: 0.0.40
codegen_flags: <defaults>
</compile_context>

<pallas_src>
import jax
import jax.numpy as jnp
from jax.experimental import pallas as pl
from jax.experimental.pallas import tpu as pltpu


def _round_up(x: int, m: int) -> int:
    return ((x + m - 1) // m) * m


def _mf_kernel(uf_ref, if_ref, b_ref, out_ref):
    # uf_ref / if_ref : (F, TB)  gathered user/item factor rows, batch on lanes
    # b_ref           : (2, TB)  packed user/item biases (lane-dense)
    # out_ref         : (1, TB)  predictions (lane-dense)
    uf = uf_ref[...].astype(jnp.float32)
    itf = if_ref[...].astype(jnp.float32)
    dot = jnp.sum(uf * itf, axis=0, keepdims=True)          # (1, TB) sublane reduce
    bias = jnp.sum(b_ref[...].astype(jnp.float32), axis=0, keepdims=True)
    out_ref[...] = dot + bias


def _mf_forward_reference(user_factors, item_factors, user_biases, item_biases,
                          user, item):
    pred = (user_biases[user] + item_biases[item]
            + (user_factors[user] * item_factors[item]).sum(axis=1, keepdims=True))
    return jnp.squeeze(pred, axis=-1)


def mf_forward_pallas(user_factors, item_factors, user_biases, item_biases,
                      user, item, *, tile_b=8192, factor_stream_dtype=None):
    """Pallas path: batch-tiled, lane-major factors, pipelined DMA."""
    B = user.shape[0]
    F = user_factors.shape[1]

    # Tile size: multiple of 128 rows; cap so there are >=2 grid steps when the
    # batch allows it (v7x has 2 TensorCores and the grid axis is "parallel").
    tile_b = _round_up(max(int(tile_b), 128), 128)
    B128 = _round_up(B, 128)
    if B128 >= 256:
        TB = min(tile_b, _round_up(pl.cdiv(B128, 2), 128))
    else:
        TB = min(tile_b, B128)
    num_tiles = pl.cdiv(B, TB)
    B_pad = num_tiles * TB

    # Pad index vectors (padding rows gather row 0 and are sliced off at the end).
    if B_pad != B:
        pad = B_pad - B
        user = jnp.concatenate([user, jnp.zeros((pad,), dtype=user.dtype)])
        item = jnp.concatenate([item, jnp.zeros((pad,), dtype=item.dtype)])

    # Glue: gather directly into the lane-major (F, B_pad) layout by
    # transposing the (small) tables first; no relayout is needed in-kernel.
    # TODO(synk): fuse these gathers into the kernel so the dominant HBM stream
    # is read only once (see module docstring).
    stream_dt = factor_stream_dtype if factor_stream_dtype is not None else user_factors.dtype
    uf_t = jnp.transpose(user_factors).astype(stream_dt)[:, user]     # (F, B_pad)
    if_t = jnp.transpose(item_factors).astype(stream_dt)[:, item]     # (F, B_pad)
    biases = jnp.stack([user_biases[user, 0], item_biases[item, 0]], axis=0)  # (2, B_pad)

    itemsize = jnp.dtype(stream_dt).itemsize
    cost = pl.CostEstimate(
        flops=2 * B_pad * F + 2 * B_pad,
        transcendentals=0,
        bytes_accessed=2 * B_pad * F * itemsize + 2 * B_pad * 4 + B_pad * 4,
    )

    pred = pl.pallas_call(
        _mf_kernel,
        out_shape=jax.ShapeDtypeStruct((1, B_pad), jnp.float32),
        grid_spec=pltpu.PrefetchScalarGridSpec(
            num_scalar_prefetch=0,
            grid=(num_tiles,),
            in_specs=[
                pl.BlockSpec((F, TB), lambda i: (0, i)),
                pl.BlockSpec((F, TB), lambda i: (0, i)),
                pl.BlockSpec((2, TB), lambda i: (0, i)),
            ],
            out_specs=pl.BlockSpec((1, TB), lambda i: (0, i)),
        ),
        compiler_params=pltpu.CompilerParams(
            # Batch tiles are independent -> shard across TensorCores on v7x.
            dimension_semantics=("parallel",),
        ),
        cost_estimate=cost,
    )(uf_t, if_t, biases)

    # pred.squeeze() in the PyTorch module: (1, B_pad) -> (B,)
    return pred[0, :B]


def mf_forward(user_factors, item_factors, user_biases, item_biases,
               user, item, *, tile_b=8192, force_pallas=False):
    """Equivalent of Model.forward(user, item)."""
    B = user.shape[0]
    if not force_pallas and B < 512:
        # Tiny batches: grid-step + launch overhead dominates; let XLA fuse.
        return _mf_forward_reference(user_factors, item_factors,
                                     user_biases, item_biases, user, item)
    return mf_forward_pallas(user_factors, item_factors, user_biases,
                             item_biases, user, item, tile_b=tile_b)


def init_params(key, n_users, n_items, n_factors=20, dtype=jnp.float32):
    """Deterministic parameter init mirroring the PyTorch __init__."""
    ku, ki = jax.random.split(key)
    # torch.nn.init.xavier_uniform_ on an (n, f) weight:
    #   bound = sqrt(6 / (fan_in + fan_out)) = sqrt(6 / (n + f))
    bu = (6.0 / (n_users + n_factors)) ** 0.5
    bi = (6.0 / (n_items + n_factors)) ** 0.5
    user_factors = jax.random.uniform(
        ku, (n_users, n_factors), dtype, minval=-bu, maxval=bu)
    item_factors = jax.random.uniform(
        ki, (n_items, n_factors), dtype, minval=-bi, maxval=bi)
    user_biases = jnp.zeros((n_users, 1), dtype)
    item_biases = jnp.zeros((n_items, 1), dtype)
    return user_factors, item_factors, user_biases, item_biases


if __name__ == "__main__":
    key = jax.random.PRNGKey(0)
    n_users, n_items, n_factors = 50, 40, 20

    params = init_params(key, n_users, n_items, n_factors)
    user_factors, item_factors, user_biases, item_biases = params

    # --- small batch, forced through the Pallas path (single 128-row tile) ---
    batch = 8
    k1, k2 = jax.random.split(jax.random.PRNGKey(0), 2)
    user = jax.random.randint(k1, (batch,), 0, n_users, dtype=jnp.int32)
    item = jax.random.randint(k2, (batch,), 0, n_items, dtype=jnp.int32)

    pred = mf_forward(user_factors, item_factors, user_biases, item_biases,
                      user, item, force_pallas=True)
    pred = jax.block_until_ready(pred)
    ref = _mf_forward_reference(user_factors, item_factors, user_biases,
                                item_biases, user, item)
    assert pred.shape == (batch,)
    assert jnp.allclose(pred, ref, rtol=1e-5, atol=1e-5), (pred, ref)

    # --- multi-tile path: small tiles exercise the grid + padding logic ---
    batch2 = 300
    k3, k4 = jax.random.split(jax.random.PRNGKey(1), 2)
    user2 = jax.random.randint(k3, (batch2,), 0, n_users, dtype=jnp.int32)
    item2 = jax.random.randint(k4, (batch2,), 0, n_items, dtype=jnp.int32)

    pred2 = mf_forward_pallas(user_factors, item_factors, user_biases,
                              item_biases, user2, item2, tile_b=128)
    pred2 = jax.block_until_ready(pred2)
    ref2 = _mf_forward_reference(user_factors, item_factors, user_biases,
                                 item_biases, user2, item2)
    assert pred2.shape == (batch2,)
    assert jnp.allclose(pred2, ref2, rtol=1e-5, atol=1e-5)

    # --- default tiling path (TB capped so >=2 grid steps for v7x sharding) ---
    pred3 = mf_forward_pallas(user_factors, item_factors, user_biases,
                              item_biases, user2, item2)
    pred3 = jax.block_until_ready(pred3)
    assert jnp.allclose(pred3, ref2, rtol=1e-5, atol=1e-5)

    print("KERNEL_OK")
</pallas_src>

<mosaic_0001>
module attributes {stable_mosaic.version = 11 : i64} {
  func.func @_mf_kernel(%arg0: i32, %arg1: memref<20x128xf32, #tpu.memory_space<vmem>>, %arg2: memref<20x128xf32, #tpu.memory_space<vmem>>, %arg3: memref<2x128xf32, #tpu.memory_space<vmem>>, %arg4: memref<1x128xf32, #tpu.memory_space<vmem>>) attributes {dimension_semantics = [#tpu.dimension_semantics<parallel>], iteration_bounds = array<i64: 1>, scalar_prefetch = 0 : i64, scratch_operands = 0 : i64, tpu.core_type = #tpu.core_type<tc>, window_params = [{transform_indices = @transform_0, window_bounds = array<i64: 20, 128>}, {transform_indices = @transform_1, window_bounds = array<i64: 20, 128>}, {transform_indices = @transform_2, window_bounds = array<i64: 2, 128>}, {transform_indices = @transform_3, window_bounds = array<i64: 1, 128>}]} {
    %c0 = arith.constant 0 : index
    %c0_0 = arith.constant 0 : index
    %0 = vector.load %arg1[%c0, %c0_0] : memref<20x128xf32, #tpu.memory_space<vmem>>, vector<20x128xf32>
    %c0_1 = arith.constant 0 : index
    %c0_2 = arith.constant 0 : index
    %1 = vector.load %arg2[%c0_1, %c0_2] : memref<20x128xf32, #tpu.memory_space<vmem>>, vector<20x128xf32>
    %2 = arith.mulf %0, %1 : vector<20x128xf32>
    %cst = arith.constant dense<0.000000e+00> : vector<128xf32>
    %3 = vector.multi_reduction <add>, %2, %cst [0] : vector<20x128xf32> to vector<128xf32>
    %4 = vector.shape_cast %3 : vector<128xf32> to vector<1x128xf32>
    %c0_3 = arith.constant 0 : index
    %c0_4 = arith.constant 0 : index
    %5 = vector.load %arg3[%c0_3, %c0_4] : memref<2x128xf32, #tpu.memory_space<vmem>>, vector<2x128xf32>
    %cst_5 = arith.constant dense<0.000000e+00> : vector<128xf32>
    %6 = vector.multi_reduction <add>, %5, %cst_5 [0] : vector<2x128xf32> to vector<128xf32>
    %7 = vector.shape_cast %6 : vector<128xf32> to vector<1x128xf32>
    %8 = arith.addf %4, %7 : vector<1x128xf32>
    %c0_6 = arith.constant 0 : index
    %c0_7 = arith.constant 0 : index
    %9 = vector.load %arg4[%c0_6, %c0_7] : memref<1x128xf32, #tpu.memory_space<vmem>>, vector<1x128xf32>
    tpu.vector_store %arg4[%c0_6, %c0_7], %8 {strides = array<i32>} : memref<1x128xf32, #tpu.memory_space<vmem>>, vector<1x128xf32>,
    return
  }
  func.func @transform_0(%arg0: i32) -> (i32, i32) {
    %c0_i32 = arith.constant 0 : i32
    %c0_i32_0 = arith.constant 0 : i32
    return %c0_i32, %arg0 : i32, i32
  }
  func.func @transform_1(%arg0: i32) -> (i32, i32) {
    %c0_i32 = arith.constant 0 : i32
    %c0_i32_0 = arith.constant 0 : i32
    return %c0_i32, %arg0 : i32, i32
  }
  func.func @transform_2(%arg0: i32) -> (i32, i32) {
    %c0_i32 = arith.constant 0 : i32
    %c0_i32_0 = arith.constant 0 : i32
    return %c0_i32, %arg0 : i32, i32
  }
  func.func @transform_3(%arg0: i32) -> (i32, i32) {
    %c0_i32 = arith.constant 0 : i32
    %c0_i32_0 = arith.constant 0 : i32
    return %c0_i32, %arg0 : i32, i32
  }
}

</mosaic_0001>

<bundles_post_ra>
// kernel: tpu_custom_call.1
= control target key start
LH: loop header
LB: loop body
LE: loop exit
PB: predicated region body
PF: predicated region fallthrough
CT: control target
= control target key end

     0   :  { %8 = vsyncpa [#allocation3], 0  ;;  %s197_s0 = inlined_call_operand.hbm [shape: f32[20,128], index: 0, kind: input, shape index: {}]   ;;  %s198_s1 = inlined_call_operand.hbm [shape: f32[20,128], index: 1, kind: input, shape index: {}]   ;;  %s199_s2 = inlined_call_operand.vmem [shape: f32[2,128], index: 2, kind: input, shape index: {}]   ;;  %s200_s3 = inlined_call_operand.hbm [shape: f32[1,128], index: 3, kind: output, shape index: {}]  }
   0x1   :  { %9 = vsyncpa [#allocation6], 0 }
   0x2   :  { %10 = vsyncpa [#allocation4], 0  ;;  %s160_s12 = smov [#allocation2]  }
   0x3   :  { %s16_s13 = sshll.u32 %s160_s12, 4  ;;  %s17_s13 = int_to_ptr.vmem [resolvable:$true] %s16_s13 }
   0x4   :  { %s102_s14 = scalar_lea.vmem %s17_s13, 384  ;;  %p107_p1 = scmp.lt.s32.totalorder %s17_s13, %s17_s13 }
   0x5   :  { %p103_p0 = scmp.ne.s32.totalorder %s17_s13, %s102_s14  ;;  %p108_p2 = scmp.lt.s32.totalorder %s102_s14, %s102_s14 }
   0x7   :  { %p109_p3 = por %p108_p2, %p107_p1 }
   0x9   :  { %p110_p4 = pnand %p109_p3, %p103_p0 }
   0xb   :  { %113 = shalt.err (!%p110_p4)
}
   0xc   :  { %s161_s15 = smov 128   ;;  %s162_s16 = smov 8  }
   0xd   :  { %22 = dma.hbm_to_vmem [thread:$0]  %s197_s0, 384, %s17_s13, [#allocation3], %s161_s15, %s161_s15, %s162_s16  }
   0xe   :  { %s163_s19 = smov [#allocation5]  }
   0xf   :  { %s28_s20 = sshll.u32 %s163_s19, 4  ;;  %s29_s20 = int_to_ptr.vmem [resolvable:$true] %s28_s20 }
  0x10   :  { %s122_s21 = scalar_lea.vmem %s29_s20, 384  ;;  %p127_p6 = scmp.lt.s32.totalorder %s29_s20, %s29_s20 }
  0x11   :  { %p123_p5 = scmp.ne.s32.totalorder %s29_s20, %s122_s21  ;;  %p128_p7 = scmp.lt.s32.totalorder %s122_s21, %s122_s21 }
  0x13   :  { %p129_p8 = por %p128_p7, %p127_p6 }
  0x15   :  { %p130_p9 = pnand %p129_p8, %p123_p5 }
  0x17   :  { %133 = shalt.err (!%p130_p9)
}
  0x18   :  { %34 = dma.hbm_to_vmem [thread:$0]  %s198_s1, 384, %s29_s20, [#allocation6], %s161_s15, %s161_s15, %s162_s16  }
  0x19   :  { %154 = dma.done.wait [#allocation3], 384  }
  0x1a   :  { %155 = vsyncadd [#allocation3], 4294966912 }
  0x1b   :  { %156 = dma.done.wait [#allocation6], 384  }
  0x1c   :  { %157 = vsyncadd [#allocation6], 4294966912  ;;  %v43_v0 = vld [vmem:[#allocation2] sm:$0xff]  ;;  %v44_v1 = vld [vmem:[#allocation2 + $0x8] sm:$0xff]  ;;  %vm63_vm0 = vcmask 1041408   ;;  %vm53_vm1 = vcmask 1043456  }
  0x1d   :  { %v45_v2 = vld [vmem:[#allocation2 + $0x10] sm:$0xf]  ;;  %v46_v3 = vld [vmem:[#allocation5] sm:$0xff]  ;;  %v47_v4 = vld [vmem:[#allocation5 + $0x8] sm:$0xff]  ;;  %s164_s1 = smov [#allocation7]  }
  0x1e   :  { %v48_v5 = vld [vmem:[#allocation5 + $0x10] sm:$0xf]  ;;  %v49_v6 = vmul.f32 %v46_v3, %v43_v0  ;;  %v50_v7 = vmul.f32 %v47_v4, %v44_v1  ;;  %v62_v9 = vld [vmem:[%s199_s2] sm:$0x3]  ;;  %s79_s25 = sshll.u32 %s164_s1, 4  ;;  %s80_s25 = int_to_ptr.vmem [resolvable:$true] %s79_s25 }
  0x1f   :  { %v51_v8 = vmul.f32 %v48_v5, %v45_v2  ;;  %v64_v10 = vsel %vm63_vm0, %v62_v9, 0.0  ;;  %s134_s2 = scalar_lea.vmem %s80_s25, 16  ;;  %s138_s26 = scalar_lea.vmem %s80_s25, 32 }
  0x20   :  { %v52_v11 = vadd.f32 %v50_v7, %v49_v6  ;;  %v65_v13 = vrot.slane %v64_v10, 4  ;;  %p135_p10 = scmp.ne.s32.totalorder %s80_s25, %s134_s2  ;;  %p139_p11 = scmp.lt.s32.totalorder %s80_s25, %s80_s25 }
  0x21   :  { %v54_v12 = vsel %vm53_vm1, %v51_v8, 0.0  ;;  %p140_p12 = scmp.lt.s32.totalorder %s138_s26, %s134_s2 }
  0x22   :  { %v55_v14 = vadd.f32 %v54_v12, %v52_v11  ;;  %v66_v15 = vadd.f32 %v65_v13, %v64_v10 }
  0x23   :  { %p141_p13 = por %p140_p12, %p139_p11 }
  0x24   :  { %v56_v16 = vrot.slane %v55_v14, 4  ;;  %v67_v17 = vrot.slane %v66_v15, 2 }
  0x25   :  { %p142_p0 = pnand %p141_p13, %p135_p10 }
  0x26   :  { %v57_v18 = vadd.f32 %v56_v16, %v55_v14  ;;  %v68_v19 = vadd.f32 %v67_v17, %v66_v15 }
  0x28   :  { %v58_v20 = vrot.slane %v57_v18, 2  ;;  %v69_v21 = vrot.slane %v68_v19, 1 }
  0x2a   :  { %v59_v22 = vadd.f32 %v58_v20, %v57_v18  ;;  %v70_v24 = vadd.f32 %v69_v21, %v68_v19 }
  0x2c   :  { %v60_v23 = vrot.slane %v59_v22, 1 }
  0x2e   :  { %v61_v25 = vadd.f32 %v60_v23, %v59_v22 }
  0x30   :  { %v71_v26 = vadd.f32 %v70_v24, %v61_v25 }
  0x32   :  { %72 = vst [vmem:[#allocation7] sm:$0x1] %v71_v26 }
  0x33   :  { %145 = shalt.err (!%p142_p0)
}
  0x34   :  { %82 = dma.vmem_to_hbm [thread:$0]  %s80_s25, 16, %s200_s3, [#allocation4]  }
  0x35   :  { %158 = dma.done.wait [#allocation4], 16  }
  0x36   :  { %159 = vsyncadd [#allocation4], 4294967280 }
  0x37   :  { %86 = vsyncpa [#allocation3], 1 }
  0x38   :  { %87 = vsyncpa [#allocation6], 1 }
  0x39   :  { %88 = vsyncpa [#allocation4], 1 }

</bundles_post_ra>
